<compile_context>
chip_gen: v6e
topology: v6e:2x2x1
jax: 0.10.0
libtpu: 0.0.40
codegen_flags: <defaults>
</compile_context>

<pallas_src>
import functools

import jax
import jax.numpy as jnp
from jax.experimental import pallas as pl
from jax.experimental.pallas import tpu as pltpu

OUT_LANES = 128          # lane-dense padded width of the head output (true width is 2)
HEAD_OUT = 2
MAX_UNROLL = 8           # static unroll threshold for the GFLU stage loop


# ----------------------------------------------------------------------------------
# Shared math helpers
# ----------------------------------------------------------------------------------
def _sigmoid(v):
    # Stable sigmoid routed through the EUP tanh unit (no exp overflow, no VALU divide).
    return 0.5 * (jnp.tanh(0.5 * v) + 1.0)


def _t_softmax_rows(fm, t):
    """Spec t_softmax applied row-wise: fm (S, F), t (S, 1) with t >= 0."""
    maxes = jnp.max(fm, axis=-1, keepdims=True)
    fmm = fm - maxes
    w = jnp.maximum(fmm + t, 0.0) + 1e-8
    logits = fmm + jnp.log(w)
    logits = logits - jnp.max(logits, axis=-1, keepdims=True)
    e = jnp.exp(logits)
    return e / jnp.sum(e, axis=-1, keepdims=True)


# ----------------------------------------------------------------------------------
# Pallas kernel: GFLU stages + MLP head (one batch tile per grid step)
# ----------------------------------------------------------------------------------
def _gandalf_kernel(n_stages, n_features, unroll,
                    x_ref,
                    wfx_ref, wh_ref, bin_ref,
                    wrh_ref, wxx_ref, bo_ref,
                    w1_ref, b1_ref, w2_ref, b2_ref, w3_ref, b3_ref,
                    out_ref):
    F = n_features
    x = x_ref[...]                                   # (TB, F)

    if unroll:
        # x-path contributions of ALL stages in two fused matmuls (masks pre-folded
        # into wfx).  Only the h-dependent matmuls stay on the per-stage chain.
        pre_in = jnp.dot(x, wfx_ref[...], preferred_element_type=jnp.float32)   # (TB, S*2F)
        pre_out = jnp.dot(x, wxx_ref[...], preferred_element_type=jnp.float32)  # (TB, S*F)
        h = x
        for d in range(n_stages):                    # static unroll for small S
            zr = (pre_in[:, 2 * F * d: 2 * F * (d + 1)]
                  + jnp.dot(h, wh_ref[d], preferred_element_type=jnp.float32)
                  + bin_ref[pl.ds(d, 1), :])         # (TB, 2F)
            z = _sigmoid(zr[:, :F])
            r = _sigmoid(zr[:, F:])
            h_out = jnp.tanh(
                jnp.dot(r * h, wrh_ref[d], preferred_element_type=jnp.float32)
                + pre_out[:, F * d: F * (d + 1)]
                + bo_ref[pl.ds(d, 1), :])
            # dropout(p=0) == identity
            h = (1.0 - z) * h + z * h_out
    else:
        # Dynamic stage indexing of stacked per-stage weights (bounded live ranges).
        def stage(d, h):
            zr = (jnp.dot(x, wfx_ref[d], preferred_element_type=jnp.float32)
                  + jnp.dot(h, wh_ref[d], preferred_element_type=jnp.float32)
                  + bin_ref[pl.ds(d, 1), :])
            z = _sigmoid(zr[:, :F])
            r = _sigmoid(zr[:, F:])
            h_out = jnp.tanh(
                jnp.dot(r * h, wrh_ref[d], preferred_element_type=jnp.float32)
                + jnp.dot(x, wxx_ref[d], preferred_element_type=jnp.float32)
                + bo_ref[pl.ds(d, 1), :])
            return (1.0 - z) * h + z * h_out

        h = jax.lax.fori_loop(0, n_stages, stage, x)

    # MLP head: Linear(F,32) -> ReLU -> Linear(32,16) -> ReLU -> Linear(16,2)
    # (final linear zero-padded to OUT_LANES columns so the store is lane-dense).
    y = jnp.maximum(jnp.dot(h, w1_ref[...], preferred_element_type=jnp.float32)
                    + b1_ref[...], 0.0)
    y = jnp.maximum(jnp.dot(y, w2_ref[...], preferred_element_type=jnp.float32)
                    + b2_ref[...], 0.0)
    out_ref[...] = (jnp.dot(y, w3_ref[...], preferred_element_type=jnp.float32)
                    + b3_ref[...])


# ----------------------------------------------------------------------------------
# Parameter packing (one-time, plain JAX) + Pallas wrapper
# ----------------------------------------------------------------------------------
def prepare_kernel_params(params, unroll):
    """Pack raw per-block parameters into the fused, mask-folded, lane-padded layout."""
    t = jnp.maximum(params["t"], 0.0)
    masks = _t_softmax_rows(params["fm"], t)                         # (S, F)
    wf = jnp.concatenate([params["wfz"], params["wfr"]], axis=-1)    # (S, F, 2F)
    wh = jnp.concatenate([params["whz"], params["whr"]], axis=-1)    # (S, F, 2F)
    b_in = jnp.concatenate([params["bz"], params["br"]], axis=-1)    # (S, 2F)
    wf = masks[:, :, None] * wf            # fold feature masks into the feature path
    wx = params["wx"]                                                # (S, F, F)
    S, F, _ = wf.shape
    if unroll:
        # Slab layout so the x-path matmuls of all stages fuse into one dot each.
        wfx = jnp.transpose(wf, (1, 0, 2)).reshape(F, S * 2 * F)     # (F, S*2F)
        wxx = jnp.transpose(wx, (1, 0, 2)).reshape(F, S * F)         # (F, S*F)
    else:
        wfx, wxx = wf, wx                                            # stacked per stage
    f_head = params["w3"].shape[0]
    w3p = jnp.zeros((f_head, OUT_LANES), jnp.float32).at[:, :HEAD_OUT].set(params["w3"])
    b3p = jnp.zeros((1, OUT_LANES), jnp.float32).at[:, :HEAD_OUT].set(params["b3"])
    return dict(wfx=wfx, wh=wh, b_in=b_in,
                wrh=params["wrh"], wxx=wxx, bo=params["bo"],
                w1=params["w1"], b1=params["b1"], w2=params["w2"], b2=params["b2"],
                w3p=w3p, b3p=b3p)


def _round_up(a, m):
    return -(-a // m) * m


def gandalf_forward(x_emb, params, n_stages, n_features):
    unroll = n_stages <= MAX_UNROLL
    kp = prepare_kernel_params(params, unroll)
    B = x_emb.shape[0]
    F = n_features
    S = n_stages

    # Batch tiling: up to 256 rows per tile (amortizes per-grid-step overhead),
    # padded to a sublane multiple of 8.
    tile_b = min(256, _round_up(B, 8))
    b_pad = _round_up(B, tile_b)
    if b_pad != B:
        x_emb = jnp.pad(x_emb, ((0, b_pad - B), (0, 0)))
    grid = (b_pad // tile_b,)

    weights = (kp["wfx"], kp["wh"], kp["b_in"], kp["wrh"], kp["wxx"], kp["bo"],
               kp["w1"], kp["b1"], kp["w2"], kp["b2"], kp["w3p"], kp["b3p"])

    def _const_map(ndim):
        return lambda i: (0,) * ndim                 # VMEM-resident across the grid

    w_specs = [pl.BlockSpec(w.shape, _const_map(w.ndim)) for w in weights]

    nbytes = lambda a: a.size * a.dtype.itemsize
    weight_bytes = sum(nbytes(w) for w in weights)
    tile_bytes = tile_b * (F + OUT_LANES) * 4
    vmem_limit = int(min(64 << 20,
                         max(32 << 20, 2 * weight_bytes + 4 * tile_bytes + (8 << 20))))

    flops = 2 * b_pad * (S * (2 * F * 2 * F + 2 * F * F)
                         + F * 32 + 32 * 16 + 16 * OUT_LANES)
    cost = pl.CostEstimate(
        flops=flops,
        transcendentals=b_pad * S * 3 * F,
        bytes_accessed=nbytes(x_emb) + weight_bytes + b_pad * OUT_LANES * 4)

    kernel = functools.partial(_gandalf_kernel, n_stages, n_features, unroll)
    out = pl.pallas_call(
        kernel,
        out_shape=jax.ShapeDtypeStruct((b_pad, OUT_LANES), jnp.float32),
        grid=grid,
        in_specs=[pl.BlockSpec((tile_b, F), lambda i: (i, 0))] + w_specs,
        out_specs=pl.BlockSpec((tile_b, OUT_LANES), lambda i: (i, 0)),
        compiler_params=pltpu.CompilerParams(
            dimension_semantics=("parallel",),
            vmem_limit_bytes=vmem_limit),
        cost_estimate=cost,
    )(x_emb, *weights)
    return out[:B, :HEAD_OUT]


# ----------------------------------------------------------------------------------
# Plain-JAX glue: Embedding1dLayer + parameter construction
# ----------------------------------------------------------------------------------
def embedding_1d(x, n_cont, emb_tables, bn):
    """Continuous -> eval-mode BatchNorm1d; categorical -> embedding lookup; concat."""
    # TODO(synk): BatchNorm1d reproduced in eval mode (running stats), not
    #             training-mode batch statistics.
    x_cont = x[:, :n_cont]
    x_cat = x[:, n_cont:].astype(jnp.int32)
    cont = (x_cont - bn["mean"]) / jnp.sqrt(bn["var"] + 1e-5) * bn["gamma"] + bn["beta"]
    embs = [tbl[x_cat[:, i]] for i, tbl in enumerate(emb_tables)]
    return jnp.concatenate([cont] + embs, axis=-1)     # (B, F)


def rsoftmax_calculate_t(fm, r=0.3, eps=1e-8):
    """Mirror of RSoftmax.calculate_t for a (n_stages, F) input and scalar r."""
    maxes = jnp.max(fm, axis=-1, keepdims=True)
    fmm = fm - maxes
    zeros_mask = jnp.exp(fmm) == 0.0
    zeros_frac = zeros_mask.sum(axis=-1, keepdims=True).astype(jnp.float32) / fm.shape[-1]
    r_arr = jnp.asarray([r], dtype=jnp.float32)
    q = jnp.clip((r_arr - zeros_frac) / (1.0 - zeros_frac), 0.0, 1.0)      # (S, 1)
    x_mm = fmm * (~zeros_mask).astype(fmm.dtype)
    t_diag = jnp.stack([jnp.quantile(x_mm[d], q[d, 0]) for d in range(fm.shape[0])])
    return (-t_diag + eps)[:, None]                                        # (S, 1)


def _linear_init(key, fan_in, fan_out):
    kw, kb = jax.random.split(key)
    bound = 1.0 / jnp.sqrt(jnp.asarray(fan_in, jnp.float32))
    Wt = jax.random.uniform(kw, (fan_in, fan_out), jnp.float32, -bound, bound)
    b = jax.random.uniform(kb, (1, fan_out), jnp.float32, -bound, bound)
    return Wt, b


def build_params(key, cat_embedding_dims, n_cont, n_stages, n_features):
    F = n_features
    k_fm, k_gflu, k_mlp, k_emb = jax.random.split(key, 4)

    # Feature masks (deterministic stand-in for the per-stage Beta(a,b) samples).
    fm = jax.random.beta(k_fm, 2.0, 5.0, (n_stages, F), dtype=jnp.float32)
    t = rsoftmax_calculate_t(fm, r=0.3)

    gkeys = jax.random.split(k_gflu, 2 * n_stages)
    wfz, whz, wfr, whr, bz, br, wrh, wx, bo = ([] for _ in range(9))
    for d in range(n_stages):
        # W_in[d]: Linear(2F, 2F); split joint weight into per-input / per-output blocks.
        Wt_in, b_in = _linear_init(gkeys[2 * d], 2 * F, 2 * F)
        wfz.append(Wt_in[:F, :F]); whz.append(Wt_in[F:, :F])
        wfr.append(Wt_in[:F, F:]); whr.append(Wt_in[F:, F:])
        bz.append(b_in[:, :F]);    br.append(b_in[:, F:])
        # W_out[d]: Linear(2F, F)
        Wt_out, b_out = _linear_init(gkeys[2 * d + 1], 2 * F, F)
        wrh.append(Wt_out[:F, :]); wx.append(Wt_out[F:, :]); bo.append(b_out)

    mkeys = jax.random.split(k_mlp, 3)
    w1, b1 = _linear_init(mkeys[0], F, 32)
    w2, b2 = _linear_init(mkeys[1], 32, 16)
    w3, b3 = _linear_init(mkeys[2], 16, HEAD_OUT)

    params = dict(
        fm=fm, t=t,
        wfz=jnp.stack(wfz), whz=jnp.stack(whz),
        wfr=jnp.stack(wfr), whr=jnp.stack(whr),
        bz=jnp.concatenate(bz, axis=0), br=jnp.concatenate(br, axis=0),
        wrh=jnp.stack(wrh), wx=jnp.stack(wx), bo=jnp.concatenate(bo, axis=0),
        w1=w1, b1=b1, w2=w2, b2=b2, w3=w3, b3=b3,
    )

    ekeys = jax.random.split(k_emb, len(cat_embedding_dims))
    emb_tables = [jax.random.normal(ekeys[i], (card, dim), jnp.float32)
                  for i, (card, dim) in enumerate(cat_embedding_dims)]
    bn = dict(gamma=jnp.ones((n_cont,), jnp.float32),
              beta=jnp.zeros((n_cont,), jnp.float32),
              mean=jnp.zeros((n_cont,), jnp.float32),
              var=jnp.ones((n_cont,), jnp.float32))
    return params, emb_tables, bn


# ----------------------------------------------------------------------------------
# Pure-JAX reference (raw un-fused params, same math, no Pallas) for correctness
# ----------------------------------------------------------------------------------
def reference_forward(x_emb, p, n_stages):
    x = x_emb
    h = x
    masks = _t_softmax_rows(p["fm"], jnp.maximum(p["t"], 0.0))
    for d in range(n_stages):
        feature = masks[d:d + 1] * x
        z = _sigmoid(feature @ p["wfz"][d] + h @ p["whz"][d] + p["bz"][d:d + 1])
        r = _sigmoid(feature @ p["wfr"][d] + h @ p["whr"][d] + p["br"][d:d + 1])
        h_out = jnp.tanh((r * h) @ p["wrh"][d] + x @ p["wx"][d] + p["bo"][d:d + 1])
        h = (1.0 - z) * h + z * h_out
    y = jnp.maximum(h @ p["w1"] + p["b1"], 0.0)
    y = jnp.maximum(y @ p["w2"] + p["b2"], 0.0)
    return y @ p["w3"] + p["b3"]


# ----------------------------------------------------------------------------------
if __name__ == "__main__":
    key = jax.random.PRNGKey(0)

    # Small config consistent with GANDALFBackbone.__init__
    cat_embedding_dims = [(5, 3), (7, 4)]        # (cardinality, embedding_dim)
    n_continuous = 9
    gflu_stages = 3
    n_features = n_continuous + sum(d for _, d in cat_embedding_dims)   # 16
    B = 8

    k_params, k_xc, k_cat = jax.random.split(key, 3)
    params, emb_tables, bn = build_params(
        k_params, cat_embedding_dims, n_continuous, gflu_stages, n_features)

    # Input x: (B, n_continuous + n_categorical); last columns are categorical indices.
    x_cont = jax.random.normal(k_xc, (B, n_continuous), jnp.float32)
    cat_keys = jax.random.split(k_cat, len(cat_embedding_dims))
    x_cat = jnp.stack(
        [jax.random.randint(cat_keys[i], (B,), 0, card)
         for i, (card, _) in enumerate(cat_embedding_dims)], axis=1).astype(jnp.float32)
    x = jnp.concatenate([x_cont, x_cat], axis=1)   # (8, 11)

    # Embedding1dLayer (glue), then the Pallas GFLU + MLP kernel.
    x_emb = embedding_1d(x, n_continuous, emb_tables, bn)        # (B, 16)
    out = gandalf_forward(x_emb, params, gflu_stages, n_features)
    out = jax.block_until_ready(out)

    ref = reference_forward(x_emb, params, gflu_stages)
    assert out.shape == (B, HEAD_OUT), out.shape
    assert bool(jnp.all(jnp.isfinite(out)))
    assert bool(jnp.allclose(out, ref, atol=1e-4, rtol=1e-4)), (out, ref)

    print("KERNEL_OK")
</pallas_src>

<mosaic_0001>
module attributes {stable_mosaic.version = 11 : i64} {
  func.func @_gandalf_kernel(%arg0: i32, %arg1: memref<8x16xf32, #tpu.memory_space<vmem>>, %arg2: memref<16x96xf32, #tpu.memory_space<vmem>>, %arg3: memref<3x16x32xf32, #tpu.memory_space<vmem>>, %arg4: memref<3x32xf32, #tpu.memory_space<vmem>>, %arg5: memref<3x16x16xf32, #tpu.memory_space<vmem>>, %arg6: memref<16x48xf32, #tpu.memory_space<vmem>>, %arg7: memref<3x16xf32, #tpu.memory_space<vmem>>, %arg8: memref<16x32xf32, #tpu.memory_space<vmem>>, %arg9: memref<1x32xf32, #tpu.memory_space<vmem>>, %arg10: memref<32x16xf32, #tpu.memory_space<vmem>>, %arg11: memref<1x16xf32, #tpu.memory_space<vmem>>, %arg12: memref<16x128xf32, #tpu.memory_space<vmem>>, %arg13: memref<1x128xf32, #tpu.memory_space<vmem>>, %arg14: memref<8x128xf32, #tpu.memory_space<vmem>>) attributes {dimension_semantics = [#tpu.dimension_semantics<parallel>], iteration_bounds = array<i64: 1>, scalar_prefetch = 0 : i64, scratch_operands = 0 : i64, tpu.core_type = #tpu.core_type<tc>, window_params = [{transform_indices = @transform_0, window_bounds = array<i64: 8, 16>}, {pipeline_mode = #tpu.pipeline_mode<synchronous>, transform_indices = @transform_1, window_bounds = array<i64: 16, 96>}, {pipeline_mode = #tpu.pipeline_mode<synchronous>, transform_indices = @transform_2, window_bounds = array<i64: 3, 16, 32>}, {pipeline_mode = #tpu.pipeline_mode<synchronous>, transform_indices = @transform_3, window_bounds = array<i64: 3, 32>}, {pipeline_mode = #tpu.pipeline_mode<synchronous>, transform_indices = @transform_4, window_bounds = array<i64: 3, 16, 16>}, {pipeline_mode = #tpu.pipeline_mode<synchronous>, transform_indices = @transform_5, window_bounds = array<i64: 16, 48>}, {pipeline_mode = #tpu.pipeline_mode<synchronous>, transform_indices = @transform_6, window_bounds = array<i64: 3, 16>}, {pipeline_mode = #tpu.pipeline_mode<synchronous>, transform_indices = @transform_7, window_bounds = array<i64: 16, 32>}, {pipeline_mode = #tpu.pipeline_mode<synchronous>, transform_indices = @transform_8, window_bounds = array<i64: 1, 32>}, {pipeline_mode = #tpu.pipeline_mode<synchronous>, transform_indices = @transform_9, window_bounds = array<i64: 32, 16>}, {pipeline_mode = #tpu.pipeline_mode<synchronous>, transform_indices = @transform_10, window_bounds = array<i64: 1, 16>}, {pipeline_mode = #tpu.pipeline_mode<synchronous>, transform_indices = @transform_11, window_bounds = array<i64: 16, 128>}, {pipeline_mode = #tpu.pipeline_mode<synchronous>, transform_indices = @transform_12, window_bounds = array<i64: 1, 128>}, {transform_indices = @transform_13, window_bounds = array<i64: 8, 128>}]} {
    %c0 = arith.constant 0 : index
    %c0_0 = arith.constant 0 : index
    %0 = vector.load %arg1[%c0, %c0_0] : memref<8x16xf32, #tpu.memory_space<vmem>>, vector<8x16xf32>
    %c0_1 = arith.constant 0 : index
    %c0_2 = arith.constant 0 : index
    %1 = vector.load %arg2[%c0_1, %c0_2] : memref<16x96xf32, #tpu.memory_space<vmem>>, vector<16x96xf32>
    %cst = arith.constant dense<0.000000e+00> : vector<8x96xf32>
    %2 = tpu.matmul %0, %1, %cst {dimension_numbers = #tpu.dot_dimension_numbers<[1], [0], [0], [1], [0, 0, 1, 1], [], []>} : vector<8x16xf32>, vector<16x96xf32>, vector<8x96xf32> -> vector<8x96xf32>
    %c0_3 = arith.constant 0 : index
    %c0_4 = arith.constant 0 : index
    %3 = vector.load %arg6[%c0_3, %c0_4] : memref<16x48xf32, #tpu.memory_space<vmem>>, vector<16x48xf32>
    %cst_5 = arith.constant dense<0.000000e+00> : vector<8x48xf32>
    %4 = tpu.matmul %0, %3, %cst_5 {dimension_numbers = #tpu.dot_dimension_numbers<[1], [0], [0], [1], [0, 0, 1, 1], [], []>} : vector<8x16xf32>, vector<16x48xf32>, vector<8x48xf32> -> vector<8x48xf32>
    %5 = vector.extract_strided_slice %2 {offsets = [0, 0], sizes = [8, 32], strides = [1, 1]} : vector<8x96xf32> to vector<8x32xf32>
    %c0_6 = arith.constant 0 : index
    %c0_7 = arith.constant 0 : index
    %c0_8 = arith.constant 0 : index
    %6 = vector.load %arg3[%c0_6, %c0_7, %c0_8] : memref<3x16x32xf32, #tpu.memory_space<vmem>>, vector<1x16x32xf32>
    %7 = vector.shape_cast %6 : vector<1x16x32xf32> to vector<16x32xf32>
    %cst_9 = arith.constant dense<0.000000e+00> : vector<8x32xf32>
    %8 = tpu.matmul %0, %7, %cst_9 {dimension_numbers = #tpu.dot_dimension_numbers<[1], [0], [0], [1], [0, 0, 1, 1], [], []>} : vector<8x16xf32>, vector<16x32xf32>, vector<8x32xf32> -> vector<8x32xf32>
    %9 = arith.addf %5, %8 : vector<8x32xf32>
    %c0_10 = arith.constant 0 : index
    %c0_11 = arith.constant 0 : index
    %10 = vector.load %arg4[%c0_10, %c0_11] : memref<3x32xf32, #tpu.memory_space<vmem>>, vector<1x32xf32>
    %11 = vector.broadcast %10 : vector<1x32xf32> to vector<8x32xf32>
    %12 = arith.addf %9, %11 : vector<8x32xf32>
    %13 = vector.extract_strided_slice %12 {offsets = [0, 0], sizes = [8, 16], strides = [1, 1]} : vector<8x32xf32> to vector<8x16xf32>
    %cst_12 = arith.constant 5.000000e-01 : f32
    %14 = vector.broadcast %cst_12 : f32 to vector<8x16xf32>
    %15 = arith.mulf %14, %13 : vector<8x16xf32>
    %16 = math.tanh %15 : vector<8x16xf32>
    %cst_13 = arith.constant 1.000000e+00 : f32
    %17 = vector.broadcast %cst_13 : f32 to vector<8x16xf32>
    %18 = arith.addf %16, %17 : vector<8x16xf32>
    %cst_14 = arith.constant 5.000000e-01 : f32
    %19 = vector.broadcast %cst_14 : f32 to vector<8x16xf32>
    %20 = arith.mulf %19, %18 : vector<8x16xf32>
    %21 = vector.extract_strided_slice %12 {offsets = [0, 16], sizes = [8, 16], strides = [1, 1]} : vector<8x32xf32> to vector<8x16xf32>
    %cst_15 = arith.constant 5.000000e-01 : f32
    %22 = vector.broadcast %cst_15 : f32 to vector<8x16xf32>
    %23 = arith.mulf %22, %21 : vector<8x16xf32>
    %24 = math.tanh %23 : vector<8x16xf32>
    %cst_16 = arith.constant 1.000000e+00 : f32
    %25 = vector.broadcast %cst_16 : f32 to vector<8x16xf32>
    %26 = arith.addf %24, %25 : vector<8x16xf32>
    %cst_17 = arith.constant 5.000000e-01 : f32
    %27 = vector.broadcast %cst_17 : f32 to vector<8x16xf32>
    %28 = arith.mulf %27, %26 : vector<8x16xf32>
    %29 = arith.mulf %28, %0 : vector<8x16xf32>
    %c0_18 = arith.constant 0 : index
    %c0_19 = arith.constant 0 : index
    %c0_20 = arith.constant 0 : index
    %30 = vector.load %arg5[%c0_18, %c0_19, %c0_20] : memref<3x16x16xf32, #tpu.memory_space<vmem>>, vector<1x16x16xf32>
    %31 = vector.shape_cast %30 : vector<1x16x16xf32> to vector<16x16xf32>
    %cst_21 = arith.constant dense<0.000000e+00> : vector<8x16xf32>
    %32 = tpu.matmul %29, %31, %cst_21 {dimension_numbers = #tpu.dot_dimension_numbers<[1], [0], [0], [1], [0, 0, 1, 1], [], []>} : vector<8x16xf32>, vector<16x16xf32>, vector<8x16xf32> -> vector<8x16xf32>
    %33 = vector.extract_strided_slice %4 {offsets = [0, 0], sizes = [8, 16], strides = [1, 1]} : vector<8x48xf32> to vector<8x16xf32>
    %34 = arith.addf %32, %33 : vector<8x16xf32>
    %c0_22 = arith.constant 0 : index
    %c0_23 = arith.constant 0 : index
    %35 = vector.load %arg7[%c0_22, %c0_23] : memref<3x16xf32, #tpu.memory_space<vmem>>, vector<1x16xf32>
    %36 = vector.broadcast %35 : vector<1x16xf32> to vector<8x16xf32>
    %37 = arith.addf %34, %36 : vector<8x16xf32>
    %38 = math.tanh %37 : vector<8x16xf32>
    %cst_24 = arith.constant 1.000000e+00 : f32
    %39 = vector.broadcast %cst_24 : f32 to vector<8x16xf32>
    %40 = arith.subf %39, %20 : vector<8x16xf32>
    %41 = arith.mulf %40, %0 : vector<8x16xf32>
    %42 = arith.mulf %20, %38 : vector<8x16xf32>
    %43 = arith.addf %41, %42 : vector<8x16xf32>
    %44 = vector.extract_strided_slice %2 {offsets = [0, 32], sizes = [8, 32], strides = [1, 1]} : vector<8x96xf32> to vector<8x32xf32>
    %c1 = arith.constant 1 : index
    %c0_25 = arith.constant 0 : index
    %c0_26 = arith.constant 0 : index
    %45 = vector.load %arg3[%c1, %c0_25, %c0_26] : memref<3x16x32xf32, #tpu.memory_space<vmem>>, vector<1x16x32xf32>
    %46 = vector.shape_cast %45 : vector<1x16x32xf32> to vector<16x32xf32>
    %cst_27 = arith.constant dense<0.000000e+00> : vector<8x32xf32>
    %47 = tpu.matmul %43, %46, %cst_27 {dimension_numbers = #tpu.dot_dimension_numbers<[1], [0], [0], [1], [0, 0, 1, 1], [], []>} : vector<8x16xf32>, vector<16x32xf32>, vector<8x32xf32> -> vector<8x32xf32>
    %48 = arith.addf %44, %47 : vector<8x32xf32>
    %c1_28 = arith.constant 1 : index
    %c0_29 = arith.constant 0 : index
    %49 = vector.load %arg4[%c1_28, %c0_29] : memref<3x32xf32, #tpu.memory_space<vmem>>, vector<1x32xf32>
    %50 = vector.broadcast %49 : vector<1x32xf32> to vector<8x32xf32>
    %51 = arith.addf %48, %50 : vector<8x32xf32>
    %52 = vector.extract_strided_slice %51 {offsets = [0, 0], sizes = [8, 16], strides = [1, 1]} : vector<8x32xf32> to vector<8x16xf32>
    %cst_30 = arith.constant 5.000000e-01 : f32
    %53 = vector.broadcast %cst_30 : f32 to vector<8x16xf32>
    %54 = arith.mulf %53, %52 : vector<8x16xf32>
    %55 = math.tanh %54 : vector<8x16xf32>
    %cst_31 = arith.constant 1.000000e+00 : f32
    %56 = vector.broadcast %cst_31 : f32 to vector<8x16xf32>
    %57 = arith.addf %55, %56 : vector<8x16xf32>
    %cst_32 = arith.constant 5.000000e-01 : f32
    %58 = vector.broadcast %cst_32 : f32 to vector<8x16xf32>
    %59 = arith.mulf %58, %57 : vector<8x16xf32>
    %60 = vector.extract_strided_slice %51 {offsets = [0, 16], sizes = [8, 16], strides = [1, 1]} : vector<8x32xf32> to vector<8x16xf32>
    %cst_33 = arith.constant 5.000000e-01 : f32
    %61 = vector.broadcast %cst_33 : f32 to vector<8x16xf32>
    %62 = arith.mulf %61, %60 : vector<8x16xf32>
    %63 = math.tanh %62 : vector<8x16xf32>
    %cst_34 = arith.constant 1.000000e+00 : f32
    %64 = vector.broadcast %cst_34 : f32 to vector<8x16xf32>
    %65 = arith.addf %63, %64 : vector<8x16xf32>
    %cst_35 = arith.constant 5.000000e-01 : f32
    %66 = vector.broadcast %cst_35 : f32 to vector<8x16xf32>
    %67 = arith.mulf %66, %65 : vector<8x16xf32>
    %68 = arith.mulf %67, %43 : vector<8x16xf32>
    %c1_36 = arith.constant 1 : index
    %c0_37 = arith.constant 0 : index
    %c0_38 = arith.constant 0 : index
    %69 = vector.load %arg5[%c1_36, %c0_37, %c0_38] : memref<3x16x16xf32, #tpu.memory_space<vmem>>, vector<1x16x16xf32>
    %70 = vector.shape_cast %69 : vector<1x16x16xf32> to vector<16x16xf32>
    %cst_39 = arith.constant dense<0.000000e+00> : vector<8x16xf32>
    %71 = tpu.matmul %68, %70, %cst_39 {dimension_numbers = #tpu.dot_dimension_numbers<[1], [0], [0], [1], [0, 0, 1, 1], [], []>} : vector<8x16xf32>, vector<16x16xf32>, vector<8x16xf32> -> vector<8x16xf32>
    %72 = vector.extract_strided_slice %4 {offsets = [0, 16], sizes = [8, 16], strides = [1, 1]} : vector<8x48xf32> to vector<8x16xf32>
    %73 = arith.addf %71, %72 : vector<8x16xf32>
    %c1_40 = arith.constant 1 : index
    %c0_41 = arith.constant 0 : index
    %74 = vector.load %arg7[%c1_40, %c0_41] : memref<3x16xf32, #tpu.memory_space<vmem>>, vector<1x16xf32>
    %75 = vector.broadcast %74 : vector<1x16xf32> to vector<8x16xf32>
    %76 = arith.addf %73, %75 : vector<8x16xf32>
    %77 = math.tanh %76 : vector<8x16xf32>
    %cst_42 = arith.constant 1.000000e+00 : f32
    %78 = vector.broadcast %cst_42 : f32 to vector<8x16xf32>
    %79 = arith.subf %78, %59 : vector<8x16xf32>
    %80 = arith.mulf %79, %43 : vector<8x16xf32>
    %81 = arith.mulf %59, %77 : vector<8x16xf32>
    %82 = arith.addf %80, %81 : vector<8x16xf32>
    %83 = vector.extract_strided_slice %2 {offsets = [0, 64], sizes = [8, 32], strides = [1, 1]} : vector<8x96xf32> to vector<8x32xf32>
    %c2 = arith.constant 2 : index
    %c0_43 = arith.constant 0 : index
    %c0_44 = arith.constant 0 : index
    %84 = vector.load %arg3[%c2, %c0_43, %c0_44] : memref<3x16x32xf32, #tpu.memory_space<vmem>>, vector<1x16x32xf32>
    %85 = vector.shape_cast %84 : vector<1x16x32xf32> to vector<16x32xf32>
    %cst_45 = arith.constant dense<0.000000e+00> : vector<8x32xf32>
    %86 = tpu.matmul %82, %85, %cst_45 {dimension_numbers = #tpu.dot_dimension_numbers<[1], [0], [0], [1], [0, 0, 1, 1], [], []>} : vector<8x16xf32>, vector<16x32xf32>, vector<8x32xf32> -> vector<8x32xf32>
    %87 = arith.addf %83, %86 : vector<8x32xf32>
    %c2_46 = arith.constant 2 : index
    %c0_47 = arith.constant 0 : index
    %88 = vector.load %arg4[%c2_46, %c0_47] : memref<3x32xf32, #tpu.memory_space<vmem>>, vector<1x32xf32>
    %89 = vector.broadcast %88 : vector<1x32xf32> to vector<8x32xf32>
    %90 = arith.addf %87, %89 : vector<8x32xf32>
    %91 = vector.extract_strided_slice %90 {offsets = [0, 0], sizes = [8, 16], strides = [1, 1]} : vector<8x32xf32> to vector<8x16xf32>
    %cst_48 = arith.constant 5.000000e-01 : f32
    %92 = vector.broadcast %cst_48 : f32 to vector<8x16xf32>
    %93 = arith.mulf %92, %91 : vector<8x16xf32>
    %94 = math.tanh %93 : vector<8x16xf32>
    %cst_49 = arith.constant 1.000000e+00 : f32
    %95 = vector.broadcast %cst_49 : f32 to vector<8x16xf32>
    %96 = arith.addf %94, %95 : vector<8x16xf32>
    %cst_50 = arith.constant 5.000000e-01 : f32
    %97 = vector.broadcast %cst_50 : f32 to vector<8x16xf32>
    %98 = arith.mulf %97, %96 : vector<8x16xf32>
    %99 = vector.extract_strided_slice %90 {offsets = [0, 16], sizes = [8, 16], strides = [1, 1]} : vector<8x32xf32> to vector<8x16xf32>
    %cst_51 = arith.constant 5.000000e-01 : f32
    %100 = vector.broadcast %cst_51 : f32 to vector<8x16xf32>
    %101 = arith.mulf %100, %99 : vector<8x16xf32>
    %102 = math.tanh %101 : vector<8x16xf32>
    %cst_52 = arith.constant 1.000000e+00 : f32
    %103 = vector.broadcast %cst_52 : f32 to vector<8x16xf32>
    %104 = arith.addf %102, %103 : vector<8x16xf32>
    %cst_53 = arith.constant 5.000000e-01 : f32
    %105 = vector.broadcast %cst_53 : f32 to vector<8x16xf32>
    %106 = arith.mulf %105, %104 : vector<8x16xf32>
    %107 = arith.mulf %106, %82 : vector<8x16xf32>
    %c2_54 = arith.constant 2 : index
    %c0_55 = arith.constant 0 : index
    %c0_56 = arith.constant 0 : index
    %108 = vector.load %arg5[%c2_54, %c0_55, %c0_56] : memref<3x16x16xf32, #tpu.memory_space<vmem>>, vector<1x16x16xf32>
    %109 = vector.shape_cast %108 : vector<1x16x16xf32> to vector<16x16xf32>
    %cst_57 = arith.constant dense<0.000000e+00> : vector<8x16xf32>
    %110 = tpu.matmul %107, %109, %cst_57 {dimension_numbers = #tpu.dot_dimension_numbers<[1], [0], [0], [1], [0, 0, 1, 1], [], []>} : vector<8x16xf32>, vector<16x16xf32>, vector<8x16xf32> -> vector<8x16xf32>
    %111 = vector.extract_strided_slice %4 {offsets = [0, 32], sizes = [8, 16], strides = [1, 1]} : vector<8x48xf32> to vector<8x16xf32>
    %112 = arith.addf %110, %111 : vector<8x16xf32>
    %c2_58 = arith.constant 2 : index
    %c0_59 = arith.constant 0 : index
    %113 = vector.load %arg7[%c2_58, %c0_59] : memref<3x16xf32, #tpu.memory_space<vmem>>, vector<1x16xf32>
    %114 = vector.broadcast %113 : vector<1x16xf32> to vector<8x16xf32>
    %115 = arith.addf %112, %114 : vector<8x16xf32>
    %116 = math.tanh %115 : vector<8x16xf32>
    %cst_60 = arith.constant 1.000000e+00 : f32
    %117 = vector.broadcast %cst_60 : f32 to vector<8x16xf32>
    %118 = arith.subf %117, %98 : vector<8x16xf32>
    %119 = arith.mulf %118, %82 : vector<8x16xf32>
    %120 = arith.mulf %98, %116 : vector<8x16xf32>
    %121 = arith.addf %119, %120 : vector<8x16xf32>
    %c0_61 = arith.constant 0 : index
    %c0_62 = arith.constant 0 : index
    %122 = vector.load %arg8[%c0_61, %c0_62] : memref<16x32xf32, #tpu.memory_space<vmem>>, vector<16x32xf32>
    %cst_63 = arith.constant dense<0.000000e+00> : vector<8x32xf32>
    %123 = tpu.matmul %121, %122, %cst_63 {dimension_numbers = #tpu.dot_dimension_numbers<[1], [0], [0], [1], [0, 0, 1, 1], [], []>} : vector<8x16xf32>, vector<16x32xf32>, vector<8x32xf32> -> vector<8x32xf32>
    %c0_64 = arith.constant 0 : index
    %c0_65 = arith.constant 0 : index
    %124 = vector.load %arg9[%c0_64, %c0_65] : memref<1x32xf32, #tpu.memory_space<vmem>>, vector<1x32xf32>
    %125 = vector.broadcast %124 : vector<1x32xf32> to vector<8x32xf32>
    %126 = arith.addf %123, %125 : vector<8x32xf32>
    %cst_66 = arith.constant 0.000000e+00 : f32
    %127 = vector.broadcast %cst_66 : f32 to vector<8x32xf32>
    %128 = arith.maximumf %126, %127 : vector<8x32xf32>
    %c0_67 = arith.constant 0 : index
    %c0_68 = arith.constant 0 : index
    %129 = vector.load %arg10[%c0_67, %c0_68] : memref<32x16xf32, #tpu.memory_space<vmem>>, vector<32x16xf32>
    %cst_69 = arith.constant dense<0.000000e+00> : vector<8x16xf32>
    %130 = tpu.matmul %128, %129, %cst_69 {dimension_numbers = #tpu.dot_dimension_numbers<[1], [0], [0], [1], [0, 0, 1, 1], [], []>} : vector<8x32xf32>, vector<32x16xf32>, vector<8x16xf32> -> vector<8x16xf32>
    %c0_70 = arith.constant 0 : index
    %c0_71 = arith.constant 0 : index
    %131 = vector.load %arg11[%c0_70, %c0_71] : memref<1x16xf32, #tpu.memory_space<vmem>>, vector<1x16xf32>
    %132 = vector.broadcast %131 : vector<1x16xf32> to vector<8x16xf32>
    %133 = arith.addf %130, %132 : vector<8x16xf32>
    %cst_72 = arith.constant 0.000000e+00 : f32
    %134 = vector.broadcast %cst_72 : f32 to vector<8x16xf32>
    %135 = arith.maximumf %133, %134 : vector<8x16xf32>
    %c0_73 = arith.constant 0 : index
    %c0_74 = arith.constant 0 : index
    %136 = vector.load %arg12[%c0_73, %c0_74] : memref<16x128xf32, #tpu.memory_space<vmem>>, vector<16x128xf32>
    %cst_75 = arith.constant dense<0.000000e+00> : vector<8x128xf32>
    %137 = tpu.matmul %135, %136, %cst_75 {dimension_numbers = #tpu.dot_dimension_numbers<[1], [0], [0], [1], [0, 0, 1, 1], [], []>} : vector<8x16xf32>, vector<16x128xf32>, vector<8x128xf32> -> vector<8x128xf32>
    %c0_76 = arith.constant 0 : index
    %c0_77 = arith.constant 0 : index
    %138 = vector.load %arg13[%c0_76, %c0_77] : memref<1x128xf32, #tpu.memory_space<vmem>>, vector<1x128xf32>
    %139 = vector.broadcast %138 : vector<1x128xf32> to vector<8x128xf32>
    %140 = arith.addf %137, %139 : vector<8x128xf32>
    %c0_78 = arith.constant 0 : index
    %c0_79 = arith.constant 0 : index
    %141 = vector.load %arg14[%c0_78, %c0_79] : memref<8x128xf32, #tpu.memory_space<vmem>>, vector<8x128xf32>
    tpu.vector_store %arg14[%c0_78, %c0_79], %140 {strides = array<i32>} : memref<8x128xf32, #tpu.memory_space<vmem>>, vector<8x128xf32>,
    return
  }
  func.func @transform_0(%arg0: i32) -> (i32, i32) {
    %c0_i32 = arith.constant 0 : i32
    %c0_i32_0 = arith.constant 0 : i32
    return %arg0, %c0_i32 : i32, i32
  }
  func.func @transform_1(%arg0: i32) -> (i32, i32) {
    %c0_i32 = arith.constant 0 : i32
    %c0_i32_0 = arith.constant 0 : i32
    %c0_i32_1 = arith.constant 0 : i32
    return %c0_i32, %c0_i32_0 : i32, i32
  }
  func.func @transform_2(%arg0: i32) -> (i32, i32, i32) {
    %c0_i32 = arith.constant 0 : i32
    %c0_i32_0 = arith.constant 0 : i32
    %c0_i32_1 = arith.constant 0 : i32
    %c0_i32_2 = arith.constant 0 : i32
    return %c0_i32, %c0_i32_0, %c0_i32_1 : i32, i32, i32
  }
  func.func @transform_3(%arg0: i32) -> (i32, i32) {
    %c0_i32 = arith.constant 0 : i32
    %c0_i32_0 = arith.constant 0 : i32
    %c0_i32_1 = arith.constant 0 : i32
    return %c0_i32, %c0_i32_0 : i32, i32
  }
  func.func @transform_4(%arg0: i32) -> (i32, i32, i32) {
    %c0_i32 = arith.constant 0 : i32
    %c0_i32_0 = arith.constant 0 : i32
    %c0_i32_1 = arith.constant 0 : i32
    %c0_i32_2 = arith.constant 0 : i32
    return %c0_i32, %c0_i32_0, %c0_i32_1 : i32, i32, i32
  }
  func.func @transform_5(%arg0: i32) -> (i32, i32) {
    %c0_i32 = arith.constant 0 : i32
    %c0_i32_0 = arith.constant 0 : i32
    %c0_i32_1 = arith.constant 0 : i32
    return %c0_i32, %c0_i32_0 : i32, i32
  }
  func.func @transform_6(%arg0: i32) -> (i32, i32) {
    %c0_i32 = arith.constant 0 : i32
    %c0_i32_0 = arith.constant 0 : i32
    %c0_i32_1 = arith.constant 0 : i32
    return %c0_i32, %c0_i32_0 : i32, i32
  }
  func.func @transform_7(%arg0: i32) -> (i32, i32) {
    %c0_i32 = arith.constant 0 : i32
    %c0_i32_0 = arith.constant 0 : i32
    %c0_i32_1 = arith.constant 0 : i32
    return %c0_i32, %c0_i32_0 : i32, i32
  }
  func.func @transform_8(%arg0: i32) -> (i32, i32) {
    %c0_i32 = arith.constant 0 : i32
    %c0_i32_0 = arith.constant 0 : i32
    %c0_i32_1 = arith.constant 0 : i32
    return %c0_i32, %c0_i32_0 : i32, i32
  }
  func.func @transform_9(%arg0: i32) -> (i32, i32) {
    %c0_i32 = arith.constant 0 : i32
    %c0_i32_0 = arith.constant 0 : i32
    %c0_i32_1 = arith.constant 0 : i32
    return %c0_i32, %c0_i32_0 : i32, i32
  }
  func.func @transform_10(%arg0: i32) -> (i32, i32) {
    %c0_i32 = arith.constant 0 : i32
    %c0_i32_0 = arith.constant 0 : i32
    %c0_i32_1 = arith.constant 0 : i32
    return %c0_i32, %c0_i32_0 : i32, i32
  }
  func.func @transform_11(%arg0: i32) -> (i32, i32) {
    %c0_i32 = arith.constant 0 : i32
    %c0_i32_0 = arith.constant 0 : i32
    %c0_i32_1 = arith.constant 0 : i32
    return %c0_i32, %c0_i32_0 : i32, i32
  }
  func.func @transform_12(%arg0: i32) -> (i32, i32) {
    %c0_i32 = arith.constant 0 : i32
    %c0_i32_0 = arith.constant 0 : i32
    %c0_i32_1 = arith.constant 0 : i32
    return %c0_i32, %c0_i32_0 : i32, i32
  }
  func.func @transform_13(%arg0: i32) -> (i32, i32) {
    %c0_i32 = arith.constant 0 : i32
    %c0_i32_0 = arith.constant 0 : i32
    return %arg0, %c0_i32 : i32, i32
  }
}

</mosaic_0001>

<bundles_post_ra>
// kernel: tpu_custom_call.1
= control target key start
LH: loop header
LB: loop body
LE: loop exit
PB: predicated region body
PF: predicated region fallthrough
CT: control target
= control target key end

     0   :  { %18 = vsyncpa [#allocation3], 0  ;;  %s1797_s0 = inlined_call_operand.hbm [shape: f32[8,16], index: 0, kind: input, shape index: {}]   ;;  %s1798_s1 = inlined_call_operand.hbm [shape: f32[16,96], index: 1, kind: input, shape index: {}]   ;;  %s1799_s2 = inlined_call_operand.vmem [shape: f32[3,16,32], index: 2, kind: input, shape index: {}]   ;;  %s1800_s3 = inlined_call_operand.hbm [shape: f32[3,32], index: 3, kind: input, shape index: {}]   ;;  %s1801_s4 = inlined_call_operand.hbm [shape: f32[3,16,16], index: 4, kind: input, shape index: {}]   ;;  %s1802_s5 = inlined_call_operand.hbm [shape: f32[16,48], index: 5, kind: input, shape index: {}]   ;;  %s1803_s6 = inlined_call_operand.hbm [shape: f32[3,16], index: 6, kind: input, shape index: {}]   ;;  %s1804_s7 = inlined_call_operand.hbm [shape: f32[16,32], index: 7, kind: input, shape index: {}]   ;;  %s1805_s8 = inlined_call_operand.hbm [shape: f32[1,32], index: 8, kind: input, shape index: {}]   ;;  %s1806_s9 = inlined_call_operand.vmem [shape: f32[32,16], index: 9, kind: input, shape index: {}]   ;;  %s1807_s10 = inlined_call_operand.vmem [shape: f32[1,16], index: 10, kind: input, shape index: {}]   ;;  %s1808_s11 = inlined_call_operand.hbm [shape: f32[16,128], index: 11, kind: input, shape index: {}]   ;;  %s1809_s12 = inlined_call_operand.vmem [shape: f32[1,128], index: 12, kind: input, shape index: {}]   ;;  %s1810_s13 = inlined_call_operand.hbm [shape: f32[8,128], index: 13, kind: output, shape index: {}]  }
   0x1   :  { %19 = vsyncpa [#allocation6], 0 }
   0x2   :  { %20 = vsyncpa [#allocation9], 0 }
   0x3   :  { %21 = vsyncpa [#allocation12], 0 }
   0x4   :  { %22 = vsyncpa [#allocation15], 0 }
   0x5   :  { %23 = vsyncpa [#allocation4], 0  ;;  %s1540_s25 = smov [#allocation5]  }
   0x6   :  { %s39_s26 = sshll.u32 %s1540_s25, 4  ;;  %s40_s26 = int_to_ptr.vmem [resolvable:$true] %s39_s26 }
   0x7   :  { %s1336_s27 = scalar_lea.vmem %s40_s26, 256  ;;  %p1341_p1 = scmp.lt.s32.totalorder %s40_s26, %s40_s26 }
   0x8   :  { %p1337_p0 = scmp.ne.s32.totalorder %s40_s26, %s1336_s27  ;;  %p1342_p2 = scmp.lt.s32.totalorder %s1336_s27, %s1336_s27 }
   0xa   :  { %p1343_p3 = por %p1342_p2, %p1341_p1 }
   0xc   :  { %p1344_p4 = pnand %p1343_p3, %p1337_p0 }
   0xe   :  { %1347 = shalt.err (!%p1344_p4)
}
   0xf   :  { %s1541_s28 = smov 128   ;;  %s1542_s29 = smov 8  }
  0x10   :  { %45 = dma.hbm_to_vmem [thread:$0]  %s1798_s1, 256, %s40_s26, [#allocation6], %s1541_s28, %s1541_s28, %s1542_s29  }
  0x11   :  { %s1543_s15 = smov [#allocation8]   ;;  %s1544_s17 = smov [#allocation11]  }
  0x12   :  { %s63_s16 = sshll.u32 %s1543_s15, 4  ;;  %s88_s18 = sshll.u32 %s1544_s17, 4  ;;  %s64_s16 = int_to_ptr.vmem [resolvable:$true] %s63_s16  ;;  %s89_s18 = int_to_ptr.vmem [resolvable:$true] %s88_s18 }
  0x13   :  { %s1356_s19 = scalar_lea.vmem %s64_s16, 768  ;;  %p1361_p6 = scmp.lt.s32.totalorder %s64_s16, %s64_s16 }
  0x14   :  { %p1357_p5 = scmp.ne.s32.totalorder %s64_s16, %s1356_s19  ;;  %p1362_p7 = scmp.lt.s32.totalorder %s1356_s19, %s1356_s19 }
  0x16   :  { %p1363_p8 = por %p1362_p7, %p1361_p6 }
  0x18   :  { %p1364_p9 = pnand %p1363_p8, %p1357_p5 }
  0x1a   :  { %1367 = shalt.err (!%p1364_p9)
}
  0x1b   :  { %69 = dma.hbm_to_vmem [thread:$0]  %s1801_s4, 768, %s64_s16, [#allocation9], %s1541_s28, %s1541_s28, %s1542_s29  }
  0x1c   :  { %s1376_s1 = scalar_lea.vmem %s89_s18, 64  ;;  %p1381_p11 = scmp.lt.s32.totalorder %s89_s18, %s89_s18 }
  0x1d   :  { %p1377_p10 = scmp.ne.s32.totalorder %s89_s18, %s1376_s1  ;;  %p1382_p12 = scmp.lt.s32.totalorder %s1376_s1, %s1376_s1 }
  0x1f   :  { %p1383_p13 = por %p1382_p12, %p1381_p11 }
  0x21   :  { %p1384_p0 = pnand %p1383_p13, %p1377_p10 }
  0x23   :  { %1387 = shalt.err (!%p1384_p0)
}
  0x24   :  { %91 = dma.hbm_to_vmem [thread:$0]  %s1803_s6, 64, %s89_s18, [#allocation12]  }
  0x25   :  { %s1545_s24 = smov [#allocation14]   ;;  %s1546_s26 = smov [#allocation2]  }
  0x26   :  { %s110_s25 = sshll.u32 %s1545_s24, 4  ;;  %s30_s27 = sshll.u32 %s1546_s26, 4  ;;  %s111_s25 = int_to_ptr.vmem [resolvable:$true] %s110_s25  ;;  %s31_s27 = int_to_ptr.vmem [resolvable:$true] %s30_s27 }
  0x27   :  { %s1396_s30 = scalar_lea.vmem %s111_s25, 16  ;;  %s1400_s4 = scalar_lea.vmem %s111_s25, 32 }
  0x28   :  { %p1397_p1 = scmp.ne.s32.totalorder %s111_s25, %s1396_s30  ;;  %p1401_p2 = scmp.lt.s32.totalorder %s111_s25, %s111_s25 }
  0x29   :  { %p1402_p3 = scmp.lt.s32.totalorder %s1400_s4, %s1396_s30 }
  0x2b   :  { %p1403_p4 = por %p1402_p3, %p1401_p2 }
  0x2d   :  { %p1404_p5 = pnand %p1403_p4, %p1397_p1 }
  0x2f   :  { %1407 = shalt.err (!%p1404_p5)
}
  0x30   :  { %113 = dma.hbm_to_vmem [thread:$0]  %s1805_s8, 16, %s111_s25, [#allocation15]  }
  0x31   :  { %s1416_s16 = scalar_lea.vmem %s31_s27, 128  ;;  %p1421_p7 = scmp.lt.s32.totalorder %s31_s27, %s31_s27 }
  0x32   :  { %p1417_p6 = scmp.ne.s32.totalorder %s31_s27, %s1416_s16  ;;  %p1422_p8 = scmp.lt.s32.totalorder %s1416_s16, %s1416_s16 }
  0x34   :  { %p1423_p9 = por %p1422_p8, %p1421_p7 }
  0x36   :  { %p1424_p10 = pnand %p1423_p9, %p1417_p6 }
  0x38   :  { %1427 = shalt.err (!%p1424_p10)
}
  0x39   :  { %33 = dma.hbm_to_vmem [thread:$0]  %s1797_s0, 128, %s31_s27, [#allocation3]  }
  0x3a   :  { %s1547_s18 = smov [#allocation7]   ;;  %s1548_s20 = smov [#allocation10]  }
  0x3b   :  { %s54_s19 = sshll.u32 %s1547_s18, 4  ;;  %s75_s21 = sshll.u32 %s1548_s20, 4  ;;  %s55_s19 = int_to_ptr.vmem [resolvable:$true] %s54_s19  ;;  %s76_s21 = int_to_ptr.vmem [resolvable:$true] %s75_s21 }
  0x3c   :  { %s1436_s1 = scalar_lea.vmem %s55_s19, 64  ;;  %p1441_p12 = scmp.lt.s32.totalorder %s55_s19, %s55_s19 }
  0x3d   :  { %p1437_p11 = scmp.ne.s32.totalorder %s55_s19, %s1436_s1  ;;  %p1442_p13 = scmp.lt.s32.totalorder %s1436_s1, %s1436_s1 }
  0x3f   :  { %p1443_p0 = por %p1442_p13, %p1441_p12 }
  0x41   :  { %p1444_p1 = pnand %p1443_p0, %p1437_p11 }
  0x43   :  { %1447 = shalt.err (!%p1444_p1)
}
  0x44   :  { %57 = dma.hbm_to_vmem [thread:$0]  %s1800_s3, 64, %s55_s19, [#allocation6]  }
  0x45   :  { %s1456_s23 = scalar_lea.vmem %s76_s21, 256  ;;  %p1461_p3 = scmp.lt.s32.totalorder %s76_s21, %s76_s21 }
  0x46   :  { %p1457_p2 = scmp.ne.s32.totalorder %s76_s21, %s1456_s23  ;;  %p1462_p4 = scmp.lt.s32.totalorder %s1456_s23, %s1456_s23 }
  0x48   :  { %p1463_p5 = por %p1462_p4, %p1461_p3 }
  0x4a   :  { %p1464_p6 = pnand %p1463_p5, %p1457_p2 }
  0x4c   :  { %1467 = shalt.err (!%p1464_p6)
}
  0x4d   :  { %81 = dma.hbm_to_vmem [thread:$0]  %s1802_s5, 256, %s76_s21, [#allocation9], %s1541_s28, %s1541_s28, %s1542_s29  }
  0x4e   :  { %s1549_s25 = smov [#allocation13]   ;;  %s1550_s27 = smov [#allocation16]  }
  0x4f   :  { %s97_s26 = sshll.u32 %s1549_s25, 4  ;;  %s123_s3 = sshll.u32 %s1550_s27, 4  ;;  %s98_s26 = int_to_ptr.vmem [resolvable:$true] %s97_s26  ;;  %s124_s3 = int_to_ptr.vmem [resolvable:$true] %s123_s3 }
  0x50   :  { %s1476_s30 = scalar_lea.vmem %s98_s26, 256  ;;  %p1481_p8 = scmp.lt.s32.totalorder %s98_s26, %s98_s26 }
  0x51   :  { %p1477_p7 = scmp.ne.s32.totalorder %s98_s26, %s1476_s30  ;;  %p1482_p9 = scmp.lt.s32.totalorder %s1476_s30, %s1476_s30 }
  0x53   :  { %p1483_p10 = por %p1482_p9, %p1481_p8 }
  0x55   :  { %p1484_p11 = pnand %p1483_p10, %p1477_p7 }
  0x57   :  { %1487 = shalt.err (!%p1484_p11)
}
  0x58   :  { %103 = dma.hbm_to_vmem [thread:$0]  %s1804_s7, 256, %s98_s26, [#allocation12], %s1541_s28, %s1541_s28, %s1542_s29  }
  0x59   :  { %s1496_s5 = scalar_lea.vmem %s124_s3, 256  ;;  %p1501_p13 = scmp.lt.s32.totalorder %s124_s3, %s124_s3 }
  0x5a   :  { %p1497_p12 = scmp.ne.s32.totalorder %s124_s3, %s1496_s5  ;;  %p1502_p0 = scmp.lt.s32.totalorder %s1496_s5, %s1496_s5 }
  0x5c   :  { %p1503_p1 = por %p1502_p0, %p1501_p13 }
  0x5e   :  { %p1504_p2 = pnand %p1503_p1, %p1497_p12 }
  0x60   :  { %1507 = shalt.err (!%p1504_p2)
}
  0x61   :  { %129 = dma.hbm_to_vmem [thread:$0]  %s1808_s11, 256, %s124_s3, [#allocation15], %s1541_s28, %s1541_s28, %s1542_s29  }
  0x62   :  { %1528 = dma.done.wait [#allocation3], 128  }
  0x63   :  { %1529 = vsyncadd [#allocation3], 4294967168 }
  0x64   :  { %1530 = dma.done.wait [#allocation6], 320  }
  0x65   :  { %1531 = vsyncadd [#allocation6], 4294966976 }
  0x66   :  { %1532 = dma.done.wait [#allocation9], 1024  }
  0x67   :  { %1533 = vsyncadd [#allocation9], 4294966272 }
  0x68   :  { %1534 = dma.done.wait [#allocation12], 320  }
  0x69   :  { %1535 = vsyncadd [#allocation12], 4294966976 }
  0x6a   :  { %1536 = dma.done.wait [#allocation15], 272  }
  0x6b   :  { %1537 = vsyncadd [#allocation15], 4294967024  ;;  %v1551_v0 = vmov 0.0   ;;  %vm1552_vm0 = vmmov 0   ;;  %v161_v1 = vld [vmem:[#allocation5 + $0x8] sm:$0xff]  ;;  %v160_v2 = vld [vmem:[#allocation5] sm:$0xff] }
  0x6c   :  { %1214 = vmatprep.subr.mxu0 %v1551_v0  ;;  %1218 = vmatprep.mubr.msk.f32.mxu0 %vm1552_vm0, %v1551_v0  ;;  %v1679_v3 = vld [vmem:[#allocation2] sm:$0xff]  ;;  %vm162_vm1 = vcmask 130048   ;;  %s1553_s7 = smov 16   ;;  %v309_v4 = vld [vmem:[%s1799_s2 + $0x8] sm:$0xff]  ;;  %v237_v6 = vld [vmem:[#allocation10 + $0x8] sm:$0xff]  ;;  %s1554_s17 = smov 112  }
  0x6d   :  { %1221 = vmatprep.subr.mxu1 %v1551_v0  ;;  %1225 = vmatprep.mubr.msk.f32.mxu1 %vm1552_vm0, %v1551_v0  ;;  %v308_v5 = vld [vmem:[%s1799_s2] sm:$0xff]  ;;  %v236_v7 = vld [vmem:[#allocation10] sm:$0xff]  ;;  %v1158_v13 = vld [vmem:[#allocation7] ss:$0 sm:$0xff]  ;;  %s1555_s1 = smov 48   ;;  %s1556_s8 = smov 32  }
  0x6e   :  { %1215 = vmatpush3.msra.mxu0 %v161_v1  ;;  %391 = vrot.lane.b32.xlu0 %v1679_v3, %s1553_s7  ;;  %v396_v8 = vld [vmem:[#allocation8 + $0x8] sm:$0xff]  ;;  %v395_v9 = vld [vmem:[#allocation8] sm:$0xff]  ;;  %v1161_v27 = vld [vmem:[%s1799_s2 + $0x10] sm:$0xff]  ;;  %s1557_s22 = smov 80   ;;  %s1558_s26 = smov 96   ;;  %vm978_vm2 = vcmask 261120  }
  0x6f   :  { %1216 = vmatprep.subr.mxu0 %v1551_v0  ;;  %1222 = vmatpush3.msra.mxu1 %v237_v6  ;;  %v1162_v26 = vld [vmem:[%s1799_s2 + $0x18] sm:$0xff]  ;;  %v583_v42 = vld [vmem:[#allocation8 + $0x10] sm:$0xff]  ;;  %v1167_v61 = vld [vmem:[%s1799_s2 + $0x20] sm:$0xff]  ;;  %s1560_s29 = smov [#allocation17]  }
  0x70   :  { %1217 = vmatpush3.msra.mxu0 %v160_v2  ;;  %1223 = vmatprep.subr.mxu1 %v1551_v0  ;;  %v1160_v29 = vld [vmem:[#allocation11] ss:$0 sm:$0xff]  ;;  %v1164_v40 = vld [vmem:[#allocation7 + $0x1] ss:$0 sm:$0xff]  ;;  %v1166_v56 = vld [vmem:[#allocation11 + $0x1] ss:$0 sm:$0xff] }
  0x71   :  { %1219 = vmatmul.mubr.msk.f32.vlgmr.msra.gmra.mxu0 %vm162_vm1, %v1679_v3  ;;  %1228 = vmatprep.subr.mxu0 %v1551_v0  ;;  %v584_v41 = vld [vmem:[#allocation8 + $0x18] sm:$0xff]  ;;  %v1168_v60 = vld [vmem:[%s1799_s2 + $0x28] sm:$0xff]  ;;  %s1559_s2 = smov 64   ;;  %s1142_s6 = sshll.u32 %s1560_s29, 4  ;;  %s1143_s6 = int_to_ptr.vmem [resolvable:$true] %s1142_s6 }
  0x72   :  { %1229 = vmatpush3.msra.mxu0 %v309_v4  ;;  %1232 = vmatprep.mubr.msk.f32.mxu0 %vm1552_vm0, %v1551_v0  ;;  %p1513_p4 = scmp.lt.s32.totalorder %s1143_s6, %s1143_s6 }
  0x73   :  { %1230 = vmatprep.subr.mxu0 %v1551_v0  ;;  %1224 = vmatpush3.msra.mxu1 %v236_v7  ;;  %v1170_v7 = vld [vmem:[#allocation7 + $0x2] ss:$0 sm:$0xff] }
  0x74   :  { %1231 = vmatpush3.msra.mxu0 %v308_v5  ;;  %1226 = vmatmul.mubr.msk.f32.vlgmr.msra.gmra.mxu1 %vm162_vm1, %v1679_v3 }
  0x75   :  { %1233 = vmatmul.mubr.msk.f32.vlgmr.msra.gmra.mxu0 %vm162_vm1, %v1679_v3  ;;  %1242 = vmatprep.subr.mxu0 %v1551_v0 }
  0x76   :  { %1246 = vmatprep.mubr.msk.f32.mxu0 %vm1552_vm0, %v1551_v0  ;;  %1235 = vmatprep.subr.mxu1 %v1551_v0 }
  0x77   :  { %1236 = vmatpush3.msra.mxu1 %v396_v8  ;;  %1239 = vmatprep.mubr.msk.f32.mxu1 %vm1552_vm0, %v1551_v0 }
  0x78   :  { %1237 = vmatprep.subr.mxu1 %v1551_v0  ;;  %1243 = vmatpush3.msra.mxu0 %v1162_v26 }
  0x79   :  { %1238 = vmatpush3.msra.mxu1 %v395_v9  ;;  %1244 = vmatprep.subr.mxu0 %v1551_v0 }
  0x7a   :  { %1249 = vmatprep.subr.mxu1 %v1551_v0  ;;  %1245 = vmatpush3.msra.mxu0 %v1161_v27 }
  0x7b   :  { %1256 = vmatprep.subr.mxu0 %v1551_v0 }
  0xe0   :  { %v392_v20 = vpop.permute.xlu0 %391 }
 0x131   :  { %v1708_v10 = vpop.f32.mrf.mxu0 }
 0x133   :  { %v1220_v11 = vpop.f32.mrf.mxu0 }
 0x134   :  { %v1711_v23 = vpop.f32.mrf.mxu1  ;;  %v785_v11 = vld [vmem:[#allocation8 + $0x28] sm:$0xff] }
 0x135   :  { %v376_v12 = vpop.f32.mrf.mxu0 }
 0x136   :  { %v380_v14 = vadd.f32 %v376_v12, %v1708_v10  ;;  %v1227_v24 = vpop.f32.mrf.mxu1  ;;  %v784_v12 = vld [vmem:[#allocation8 + $0x20] sm:$0xff] }
 0x137   :  { %v1234_v15 = vpop.f32.mrf.mxu0 }
 0x138   :  { %v386_v16 = vadd.f32 %v1158_v13, %v380_v14 }
 0x13a   :  { %v387_v17 = vmul.f32 0.5, %v386_v16 }
 0x13c   :  { %1316 = vtanh.f32 %v387_v17 }
 0x149   :  { %v1317_v18 = vpop.eup %1316 }
 0x14a   :  { %v389_v19 = vadd.f32 1.0, %v1317_v18 }
 0x14c   :  { %v390_v21 = vmul.f32 0.5, %v389_v19 }
 0x14e   :  { %v394_v22 = vmul.f32 %v392_v20, %v390_v21  ;;  %v479_v33 = vsub.f32 1.0, %v390_v21 }
 0x150   :  { %398 = vrot.lane.b32.xlu0 %v394_v22, %s1554_s17  ;;  %v480_v35 = vmul.f32 %v479_v33, %v1679_v3 }
 0x1c2   :  { %v399_v25 = vpop.permute.xlu0 %398 }
 0x1c3   :  { %1240 = vmatmul.mubr.msk.f32.vlgmr.msra.gmra.mxu1 %vm162_vm1, %v399_v25  ;;  %v1172_v25 = vld [vmem:[#allocation11 + $0x2] ss:$0 sm:$0xff] }
 0x1c4   :  { %1253 = vmatprep.mubr.msk.f32.mxu1 %vm1552_vm0, %v1551_v0  ;;  %1250 = vmatpush3.msra.mxu1 %v584_v41  ;;  %v968_v41 = vld [vmem:[%s1806_s9 + $0x8] sm:$0xff] }
 0x1c5   :  { %1251 = vmatprep.subr.mxu1 %v1551_v0 }
 0x1c6   :  { %1252 = vmatpush3.msra.mxu1 %v583_v42  ;;  %v967_v42 = vld [vmem:[%s1806_s9] sm:$0xff] }
 0x1c7   :  { %1263 = vmatprep.subr.mxu1 %v1551_v0 }
 0x283   :  { %v468_v28 = vpop.f32.mrf.mxu1 }
 0x284   :  { %v469_v30 = vadd.f32 %v468_v28, %v1711_v23 }
 0x285   :  { %v1241_v31 = vpop.f32.mrf.mxu1 }
 0x286   :  { %v477_v32 = vadd.f32 %v1160_v29, %v469_v30  ;;  %v883_v29 = vld [vmem:[#allocation13 + $0x8] sm:$0xff]  ;;  %v882_v30 = vld [vmem:[#allocation13] sm:$0xff] }
 0x288   :  { %1318 = vtanh.f32 %v477_v32  ;;  %v970_v32 = vld [vmem:[%s1806_s9 + $0x18] sm:$0xff] }
 0x295   :  { %v1319_v34 = vpop.eup %1318 }
 0x296   :  { %v481_v36 = vmul.f32 %v1319_v34, %v390_v21 }
 0x298   :  { %v482_v37 = vadd.f32 %v481_v36, %v480_v35 }
 0x29a   :  { %578 = vrot.lane.b32.xlu0 %v482_v37, %s1555_s1  ;;  %1247 = vmatmul.mubr.msk.f32.vlgmr.msra.gmra.mxu0 %vm162_vm1, %v482_v37 }
 0x29b   :  { %1260 = vmatprep.mubr.msk.f32.mxu0 %vm1552_vm0, %v1551_v0  ;;  %1257 = vmatpush3.msra.mxu0 %v1168_v60 }
 0x29c   :  { %1258 = vmatprep.subr.mxu0 %v1551_v0 }
 0x29d   :  { %1259 = vmatpush3.msra.mxu0 %v1167_v61 }
 0x29e   :  { %589 = vrot.lane.b32.xlu0 %v1711_v23, %s1554_s17  ;;  %1270 = vmatprep.subr.mxu0 %v1551_v0  ;;  %s1508_s17 = scalar_lea.vmem %s1143_s6, 128 }
 0x29f   :  { %p1509_p3 = scmp.ne.s32.totalorder %s1143_s6, %s1508_s17  ;;  %p1514_p5 = scmp.lt.s32.totalorder %s1508_s17, %s1508_s17 }
 0x2a1   :  { %p1515_p6 = por %p1514_p5, %p1513_p4 }
 0x2a3   :  { %p1516_p7 = pnand %p1515_p6, %p1509_p3 }
 0x30c   :  { %v579_v51 = vpop.permute.xlu0 %578 }
 0x310   :  { %v590_v54 = vpop.permute.xlu0 %589 }
 0x35a   :  { %v555_v38 = vpop.f32.mrf.mxu0 }
 0x35b   :  { %560 = vrot.lane.b32.xlu1 %v555_v38, %s1556_s8 }
 0x35c   :  { %v1248_v39 = vpop.f32.mrf.mxu0 }
 0x35f   :  { %570 = vrot.lane.b32.xlu1 %v1164_v40, %s1556_s8  ;;  %v969_v40 = vld [vmem:[%s1806_s9 + $0x10] sm:$0xff] }
 0x3cd   :  { %v561_v43 = vpop.permute.xlu1 %560 }
 0x3ce   :  { %v563_v44 = vadd.f32 %v561_v43, %v1708_v10  ;;  %v1173_v43 = vld [vmem:[#allocation14] ss:$0 sm:$0xff] }
 0x3d1   :  { %v571_v45 = vpop.permute.xlu1 %570 }
 0x3d2   :  { %v573_v46 = vadd.f32 %v571_v45, %v563_v44 }
 0x3d4   :  { %v574_v47 = vmul.f32 0.5, %v573_v46 }
 0x3d6   :  { %1320 = vtanh.f32 %v574_v47 }
 0x3e3   :  { %v1321_v48 = vpop.eup %1320 }
 0x3e4   :  { %v576_v49 = vadd.f32 1.0, %v1321_v48  ;;  %v1054_v48 = vld [vmem:[#allocation16 + $0x8] sm:$0xff] }
 0x3e6   :  { %v577_v50 = vmul.f32 0.5, %v576_v49  ;;  %v1053_v49 = vld [vmem:[#allocation16] sm:$0xff] }
 0x3e8   :  { %v581_v52 = vmul.f32 %v579_v51, %v577_v50  ;;  %v671_v1 = vsub.f32 1.0, %v577_v50 }
 0x3ea   :  { %586 = vrot.lane.b32.xlu1 %v581_v52, %s1557_s22 }
 0x3ee   :  { %672 = vrot.lane.b32.xlu1 %v482_v37, %s1556_s8 }
 0x45c   :  { %v587_v53 = vpop.permute.xlu1 %586 }
 0x45d   :  { %1254 = vmatmul.mubr.msk.f32.vlgmr.msra.gmra.mxu1 %vm162_vm1, %v587_v53 }
 0x45e   :  { %1267 = vmatprep.mubr.msk.f32.mxu1 %vm1552_vm0, %v1551_v0  ;;  %1264 = vmatpush3.msra.mxu1 %v785_v11 }
 0x45f   :  { %1265 = vmatprep.subr.mxu1 %v1551_v0 }
 0x460   :  { %v673_v63 = vpop.permute.xlu1 %672  ;;  %1266 = vmatpush3.msra.mxu1 %v784_v12 }
 0x461   :  { %v675_v3 = vmul.f32 %v673_v63, %v671_v1  ;;  %1277 = vmatprep.subr.mxu1 %v1551_v0 }
 0x51d   :  { %v660_v55 = vpop.f32.mrf.mxu1 }
 0x51e   :  { %v661_v57 = vadd.f32 %v660_v55, %v590_v54  ;;  %v1177_v55 = vld [vmem:[%s1809_s12] ss:$0 sm:$0xff] }
 0x51f   :  { %v1255_v58 = vpop.f32.mrf.mxu1 }
 0x520   :  { %v669_v59 = vadd.f32 %v1166_v56, %v661_v57 }
 0x522   :  { %1322 = vtanh.f32 %v669_v59 }
 0x52f   :  { %v1323_v62 = vpop.eup %1322 }
 0x530   :  { %677 = vrot.lane.b32.xlu0 %v1323_v62, %s1556_s8 }
 0x5a2   :  { %v678_v2 = vpop.permute.xlu0 %677 }
 0x5a3   :  { %v680_v4 = vmul.f32 %v678_v2, %v577_v50  ;;  %v1175_v50 = vld [vmem:[%s1807_s10] ss:$0 sm:$0xff] }
 0x5a5   :  { %v681_v5 = vadd.f32 %v680_v4, %v675_v3 }
 0x5a7   :  { %686 = vrot.lane.b32.xlu1 %v681_v5, %s1558_s26 }
 0x5ab   :  { %771 = vrot.lane.b32.xlu1 %v1170_v7, %s1559_s2 }
 0x619   :  { %v687_v6 = vpop.permute.xlu1 %686 }
 0x61a   :  { %1261 = vmatmul.mubr.msk.f32.vlgmr.msra.gmra.mxu0 %vm162_vm1, %v687_v6 }
 0x61b   :  { %1274 = vmatprep.mubr.msk.f32.mxu0 %vm1552_vm0, %v1551_v0  ;;  %1271 = vmatpush3.msra.mxu0 %v883_v29 }
 0x61c   :  { %1272 = vmatprep.subr.mxu0 %v1551_v0 }
 0x61d   :  { %v772_v14 = vpop.permute.xlu1 %771  ;;  %1273 = vmatpush3.msra.mxu0 %v882_v30 }
 0x61e   :  { %1288 = vmatprep.subr.mxu0 %v1551_v0 }
 0x6da   :  { %v756_v8 = vpop.f32.mrf.mxu0 }
 0x6db   :  { %761 = vrot.lane.b32.xlu0 %v756_v8, %s1559_s2 }
 0x6dc   :  { %v1262_v9 = vpop.f32.mrf.mxu0 }
 0x6df   :  { %779 = vrot.lane.b32.xlu0 %v681_v5, %s1555_s1 }
 0x6e3   :  { %789 = vrot.lane.b32.xlu0 %v1711_v23, %s1558_s26 }
 0x74d   :  { %v762_v13 = vpop.permute.xlu0 %761 }
 0x74e   :  { %v764_v15 = vadd.f32 %v762_v13, %v1708_v10 }
 0x750   :  { %v774_v16 = vadd.f32 %v772_v14, %v764_v15 }
 0x751   :  { %v780_v21 = vpop.permute.xlu0 %779 }
 0x752   :  { %v775_v17 = vmul.f32 0.5, %v774_v16 }
 0x754   :  { %1324 = vtanh.f32 %v775_v17 }
 0x755   :  { %v790_v24 = vpop.permute.xlu0 %789 }
 0x761   :  { %v1325_v18 = vpop.eup %1324 }
 0x762   :  { %v777_v19 = vadd.f32 1.0, %v1325_v18 }
 0x764   :  { %v778_v20 = vmul.f32 0.5, %v777_v19 }
 0x766   :  { %v782_v22 = vmul.f32 %v780_v21, %v778_v20  ;;  %v871_v34 = vsub.f32 1.0, %v778_v20 }
 0x768   :  { %787 = vrot.lane.b32.xlu1 %v782_v22, %s1555_s1 }
 0x76c   :  { %872 = vrot.lane.b32.xlu1 %v681_v5, %s1556_s8 }
 0x7da   :  { %v788_v23 = vpop.permute.xlu1 %787 }
 0x7db   :  { %1268 = vmatmul.mubr.msk.f32.vlgmr.msra.gmra.mxu1 %vm162_vm1, %v788_v23 }
 0x7dc   :  { %1285 = vmatprep.mubr.msk.f32.mxu1 %vm1552_vm0, %v1551_v0  ;;  %1278 = vmatpush3.msra.mxu1 %v970_v32 }
 0x7dd   :  { %1279 = vmatprep.subr.mxu1 %v1551_v0 }
 0x7de   :  { %v873_v33 = vpop.permute.xlu1 %872  ;;  %1280 = vmatpush3.msra.mxu1 %v969_v40 }
 0x7df   :  { %v875_v36 = vmul.f32 %v873_v33, %v871_v34  ;;  %1281 = vmatprep.subr.mxu1 %v1551_v0 }
 0x7e0   :  { %1282 = vmatpush3.msra.mxu1 %v968_v41 }
 0x7e1   :  { %1283 = vmatprep.subr.mxu1 %v1551_v0 }
 0x7e2   :  { %1284 = vmatpush3.msra.mxu1 %v967_v42 }
 0x89b   :  { %v860_v10 = vpop.f32.mrf.mxu1 }
 0x89c   :  { %v861_v26 = vadd.f32 %v860_v10, %v790_v24 }
 0x89d   :  { %v1269_v27 = vpop.f32.mrf.mxu1 }
 0x89e   :  { %v869_v28 = vadd.f32 %v1172_v25, %v861_v26 }
 0x8a0   :  { %1326 = vtanh.f32 %v869_v28 }
 0x8ad   :  { %v1327_v31 = vpop.eup %1326 }
 0x8ae   :  { %877 = vrot.lane.b32.xlu0 %v1327_v31, %s1559_s2 }
 0x920   :  { %v878_v35 = vpop.permute.xlu0 %877 }
 0x921   :  { %v880_v37 = vmul.f32 %v878_v35, %v778_v20 }
 0x923   :  { %v881_v38 = vadd.f32 %v880_v37, %v875_v36 }
 0x925   :  { %892 = vrot.lane.b32.xlu1 %v881_v38, %s1559_s2 }
 0x997   :  { %v893_v39 = vpop.permute.xlu1 %892 }
 0x998   :  { %1275 = vmatmul.mubr.msk.f32.vlgmr.msra.gmra.mxu0 %vm162_vm1, %v893_v39 }
 0x999   :  { %1292 = vmatprep.mubr.msk.f32.mxu0 %vm1552_vm0, %v1551_v0  ;;  %1289 = vmatpush3.msra.mxu0 %v1054_v48 }
 0x99a   :  { %1290 = vmatprep.subr.mxu0 %v1551_v0 }
 0x99b   :  { %1291 = vmatpush3.msra.mxu0 %v1053_v49 }
 0xa58   :  { %v962_v44 = vpop.f32.mrf.mxu0 }
 0xa59   :  { %v963_v45 = vadd.f32 %v1173_v43, %v962_v44 }
 0xa5a   :  { %v1276_v46 = vpop.f32.mrf.mxu0 }
 0xa5b   :  { %v966_v47 = vmax.f32 %v963_v45, 0.0 }
 0xa5d   :  { %1286 = vmatmul.mubr.msk.f32.vlgmr.msra.gmra.mxu1 %vm978_vm2, %v966_v47 }
 0xb1d   :  { %v1048_v51 = vpop.f32.mrf.mxu1 }
 0xb1e   :  { %v1049_v52 = vadd.f32 %v1175_v50, %v1048_v51 }
 0xb1f   :  { %v1287_v53 = vpop.f32.mrf.mxu1 }
 0xb20   :  { %v1052_v54 = vmax.f32 %v1049_v52, 0.0 }
 0xb22   :  { %1293 = vmatmul.mubr.msk.f32.vlgmr.msra.gmra.mxu0 %vm162_vm1, %v1052_v54 }
 0xbe2   :  { %v1131_v56 = vpop.f32.mrf.mxu0 }
 0xbe3   :  { %v1132_v0 = vadd.f32 %v1177_v55, %v1131_v56 }
 0xbe4   :  { %v1294_v57 = vpop.f32.mrf.mxu0 }
 0xbe5   :  { %1135 = vst [vmem:[#allocation17] sm:$0xff] %v1132_v0 }
 0xbe6   :  { %1519 = shalt.err (!%p1516_p7)
}
 0xbe7   :  { %1145 = dma.vmem_to_hbm [thread:$0]  %s1143_s6, 128, %s1810_s13, [#allocation4]  }
 0xbe8   :  { %1538 = dma.done.wait [#allocation4], 128  }
 0xbe9   :  { %1539 = vsyncadd [#allocation4], 4294967168 }
 0xbea   :  { %1149 = vsyncpa [#allocation3], 1 }
 0xbeb   :  { %1150 = vsyncpa [#allocation6], 1 }
 0xbec   :  { %1151 = vsyncpa [#allocation9], 1 }
 0xbed   :  { %1152 = vsyncpa [#allocation12], 1 }
 0xbee   :  { %1153 = vsyncpa [#allocation15], 1 }
 0xbef   :  { %1154 = vsyncpa [#allocation4], 1 }

</bundles_post_ra>
